<compile_context>
chip_gen: v7x
topology: tpu7x:2x2x1
jax: 0.10.0
libtpu: 0.0.40
codegen_flags: <defaults>
</compile_context>

<pallas_src>
import numpy as np
import jax
import jax.numpy as jnp
from jax import lax
from jax.experimental import pallas as pl
from jax.experimental.pallas import tpu as pltpu


# ----------------------------------------------------------------------------
# Kernel 1: target-feature projections (tiny; single shot, whole arrays in VMEM)
# ----------------------------------------------------------------------------
def _tf_proj_kernel(tf_ref, wzi_ref, bzi_ref, wzj_ref, bzj_ref, wm_ref, bm_ref,
                    zi_ref, zj_ref, tfm_ref):
    tf = tf_ref[...].astype(jnp.float32)
    zi_ref[...] = (jnp.dot(tf, wzi_ref[...].astype(jnp.float32),
                           preferred_element_type=jnp.float32)
                   + bzi_ref[...].astype(jnp.float32)).astype(zi_ref.dtype)
    zj_ref[...] = (jnp.dot(tf, wzj_ref[...].astype(jnp.float32),
                           preferred_element_type=jnp.float32)
                   + bzj_ref[...].astype(jnp.float32)).astype(zj_ref.dtype)
    tfm_ref[...] = (jnp.dot(tf, wm_ref[...].astype(jnp.float32),
                            preferred_element_type=jnp.float32)
                    + bm_ref[...].astype(jnp.float32)).astype(tfm_ref.dtype)


# ----------------------------------------------------------------------------
# Kernel 2: pair embedding, TR rows of the pair matrix per grid step.
#   pair[i, j] = tf_emb_i[i] + tf_emb_j[j] + Linear(relpos_one_hot(i, j))
# Row-side ids come in as (TR, 1) blocks, column-side ids as (1, N) blocks so
# the residue index j sits on the lane axis. The relpos linear is evaluated as
# one batched (TR*N, bins) x (bins, c_z) MXU matmul per one-hot group.
# ----------------------------------------------------------------------------
def _make_pair_kernel(max_relative_idx, max_relative_chain):
    mri = int(max_relative_idx)
    mrc = int(max_relative_chain)
    bins_pos = 2 * mri + 2
    bins_chain = 2 * mrc + 2

    def kernel(zi_ref, zj_ref,
               pos_r_ref, pos_c_ref, asym_r_ref, asym_c_ref,
               ent_r_ref, ent_c_ref, sym_r_ref, sym_c_ref,
               w_pos_ref, w_ent_ref, w_chain_ref, b_ref, o_ref):
        tr, n, cz = o_ref.shape

        # --- relative-position integer features (j on lanes) ---
        offset = pos_r_ref[...] - pos_c_ref[...]                     # (TR, N)
        clipped = jnp.clip(offset + mri, 0, 2 * mri)
        asym_same = asym_r_ref[...] == asym_c_ref[...]
        final_offset = jnp.where(asym_same, clipped, 2 * mri + 1)

        ent_same = ent_r_ref[...] == ent_c_ref[...]
        rel_sym = sym_r_ref[...] - sym_c_ref[...]
        clipped_chain = jnp.clip(rel_sym + mrc, 0, 2 * mrc)
        final_chain = jnp.where(ent_same, clipped_chain, 2 * mrc + 1)

        # --- one-hot features, flattened so one MXU matmul covers TR*N pairs ---
        oh_pos = (final_offset[:, :, None]
                  == lax.broadcasted_iota(jnp.int32, (tr, n, bins_pos), 2)
                  ).astype(jnp.float32).reshape(tr * n, bins_pos)
        oh_chain = (final_chain[:, :, None]
                    == lax.broadcasted_iota(jnp.int32, (tr, n, bins_chain), 2)
                    ).astype(jnp.float32).reshape(tr * n, bins_chain)

        emb = (jnp.dot(oh_pos, w_pos_ref[...].astype(jnp.float32),
                       preferred_element_type=jnp.float32)
               + jnp.dot(oh_chain, w_chain_ref[...].astype(jnp.float32),
                         preferred_element_type=jnp.float32)
               + b_ref[...].astype(jnp.float32))                     # (TR*N, c_z)
        emb = emb.reshape(tr, n, cz)
        # entity_id_same feature (the single middle column of the relpos linear)
        emb = emb + (ent_same[:, :, None].astype(jnp.float32)
                     * w_ent_ref[...].astype(jnp.float32)[None, :, :])

        pair = (zi_ref[...].astype(jnp.float32)[:, None, :]
                + zj_ref[...].astype(jnp.float32)[None, :, :]
                + emb)
        o_ref[...] = pair.astype(o_ref.dtype)

    return kernel


# ----------------------------------------------------------------------------
# Kernel 3: MSA embedding, TS clusters per grid step.
#   msa_emb[s] = msa[s] @ W_msa + b_msa + tf_m
# ----------------------------------------------------------------------------
def _msa_kernel(msa_ref, w_ref, b_ref, tfm_ref, o_ref):
    ts, n, dm = msa_ref.shape
    cm = o_ref.shape[-1]
    msa = msa_ref[...].astype(jnp.float32).reshape(ts * n, dm)
    emb = (jnp.dot(msa, w_ref[...].astype(jnp.float32),
                   preferred_element_type=jnp.float32)
           + b_ref[...].astype(jnp.float32))                          # (TS*N, c_m)
    emb = emb.reshape(ts, n, cm) + tfm_ref[...].astype(jnp.float32)[None, :, :]
    o_ref[...] = emb.astype(o_ref.dtype)


# ----------------------------------------------------------------------------
# Tiling / VMEM heuristics
# ----------------------------------------------------------------------------
def _pick_tile(total, max_items, align=1):
    """Largest divisor of `total` that is <= max_items and (multiple of `align`
    or equal to `total`)."""
    divs = [d for d in range(1, total + 1)
            if total % d == 0 and (align == 1 or d % align == 0 or d == total)]
    fit = [d for d in divs if d <= max(1, max_items)]
    return max(fit) if fit else min(divs)


def _clamp_vmem(est_bytes):
    # Keep well under v7x's 64 MiB physical VMEM while raising the scoped
    # default (16 MiB v5e / 32 MiB v6e,v7x) when larger tiles need it.
    return int(min(max(int(1.3 * est_bytes), 32 * 2 ** 20), 60 * 2 ** 20))


# ----------------------------------------------------------------------------
# Wrapper
# ----------------------------------------------------------------------------
def input_embedder_multimer(batch, params, *, max_relative_idx,
                            max_relative_chain, use_chain_relative=True,
                            row_tile=None, clust_tile=None):
    if not use_chain_relative:
        raise NotImplementedError("only use_chain_relative=True is implemented")

    tf = batch["target_feat"]                      # (N, tf_dim)
    msa = batch["msa_feat"]                        # (n_clust, N, msa_dim)
    N, _ = tf.shape
    n_clust, _, msa_dim = msa.shape
    c_z = params["w_tf_z_i"].shape[1]
    c_m = params["w_tf_m"].shape[1]
    dtype = tf.dtype

    bins_pos = 2 * max_relative_idx + 2
    bins_chain = 2 * max_relative_chain + 2
    no_bins = bins_pos + 1 + bins_chain

    # ---- 1. target-feature projections (tiny, no grid) ----
    tf_emb_i, tf_emb_j, tf_m = pl.pallas_call(
        _tf_proj_kernel,
        out_shape=(jax.ShapeDtypeStruct((N, c_z), dtype),
                   jax.ShapeDtypeStruct((N, c_z), dtype),
                   jax.ShapeDtypeStruct((N, c_m), dtype)),
    )(tf,
      params["w_tf_z_i"], params["b_tf_z_i"].reshape(1, c_z),
      params["w_tf_z_j"], params["b_tf_z_j"].reshape(1, c_z),
      params["w_tf_m"], params["b_tf_m"].reshape(1, c_m))

    # ---- 2. pair embedding, row-tiled ----
    if row_tile is None:
        # double-buffered (TR, N, c_z) f32 output block within an 8 MiB budget
        row_tile = _pick_tile(N, (8 * 2 ** 20) // max(1, 2 * N * c_z * 4), align=8)
    if N % row_tile != 0 or not (row_tile % 8 == 0 or row_tile == N):
        raise ValueError(f"row_tile={row_tile} must divide N={N} and be a "
                         "multiple of 8 (or equal N)")
    grid_rows = N // row_tile

    ids = {k: jnp.asarray(batch[k], jnp.int32)
           for k in ("residue_index", "asym_id", "entity_id", "sym_id")}
    pos_r, pos_c = ids["residue_index"].reshape(N, 1), ids["residue_index"].reshape(1, N)
    asym_r, asym_c = ids["asym_id"].reshape(N, 1), ids["asym_id"].reshape(1, N)
    ent_r, ent_c = ids["entity_id"].reshape(N, 1), ids["entity_id"].reshape(1, N)
    sym_r, sym_c = ids["sym_id"].reshape(N, 1), ids["sym_id"].reshape(1, N)

    w_rel = params["w_relpos"]                     # (no_bins, c_z)
    assert w_rel.shape[0] == no_bins
    w_pos = w_rel[:bins_pos]                       # (bins_pos, c_z)
    w_ent = w_rel[bins_pos:bins_pos + 1]           # (1, c_z)
    w_chain = w_rel[bins_pos + 1:]                 # (bins_chain, c_z)
    b_rel = params["b_relpos"].reshape(1, c_z)

    row_spec = pl.BlockSpec((row_tile, 1), lambda i: (i, 0))
    col_spec = pl.BlockSpec((1, N), lambda i: (0, 0))

    out_block_bytes = row_tile * N * c_z * 4
    pair_vmem = _clamp_vmem(6 * out_block_bytes + 4 * N * c_z * 4
                            + 2 * (no_bins + 2) * c_z * 4 + (1 << 20))

    pair_emb = pl.pallas_call(
        _make_pair_kernel(max_relative_idx, max_relative_chain),
        out_shape=jax.ShapeDtypeStruct((N, N, c_z), dtype),
        grid=(grid_rows,),
        in_specs=[
            pl.BlockSpec((row_tile, c_z), lambda i: (i, 0)),     # tf_emb_i rows
            pl.BlockSpec((N, c_z), lambda i: (0, 0)),            # tf_emb_j all
            row_spec, col_spec,                                  # residue_index
            row_spec, col_spec,                                  # asym_id
            row_spec, col_spec,                                  # entity_id
            row_spec, col_spec,                                  # sym_id
            pl.BlockSpec((bins_pos, c_z), lambda i: (0, 0)),     # W[:bins_pos]
            pl.BlockSpec((1, c_z), lambda i: (0, 0)),            # W[entity col]
            pl.BlockSpec((bins_chain, c_z), lambda i: (0, 0)),   # W[chain bins]
            pl.BlockSpec((1, c_z), lambda i: (0, 0)),            # bias
        ],
        out_specs=pl.BlockSpec((row_tile, N, c_z), lambda i: (i, 0, 0)),
        compiler_params=pltpu.CompilerParams(
            dimension_semantics=("parallel",),
            vmem_limit_bytes=pair_vmem),
    )(tf_emb_i, tf_emb_j,
      pos_r, pos_c, asym_r, asym_c, ent_r, ent_c, sym_r, sym_c,
      w_pos, w_ent, w_chain, b_rel)

    # ---- 3. MSA embedding, cluster-tiled ----
    if clust_tile is None:
        per_clust = 2 * N * (msa_dim + c_m) * 4
        clust_tile = _pick_tile(n_clust, (8 * 2 ** 20) // max(1, per_clust), align=1)
    if n_clust % clust_tile != 0:
        raise ValueError(f"clust_tile={clust_tile} must divide n_clust={n_clust}")
    grid_clust = n_clust // clust_tile

    msa_block_bytes = clust_tile * N * (msa_dim + c_m) * 4
    msa_vmem = _clamp_vmem(3 * msa_block_bytes + 2 * N * c_m * 4
                           + 2 * msa_dim * c_m * 4 + (1 << 20))

    msa_emb = pl.pallas_call(
        _msa_kernel,
        out_shape=jax.ShapeDtypeStruct((n_clust, N, c_m), dtype),
        grid=(grid_clust,),
        in_specs=[
            pl.BlockSpec((clust_tile, N, msa_dim), lambda s: (s, 0, 0)),
            pl.BlockSpec((msa_dim, c_m), lambda s: (0, 0)),
            pl.BlockSpec((1, c_m), lambda s: (0, 0)),
            pl.BlockSpec((N, c_m), lambda s: (0, 0)),
        ],
        out_specs=pl.BlockSpec((clust_tile, N, c_m), lambda s: (s, 0, 0)),
        compiler_params=pltpu.CompilerParams(
            dimension_semantics=("parallel",),
            vmem_limit_bytes=msa_vmem),
    )(msa, params["w_msa_m"], params["b_msa_m"].reshape(1, c_m), tf_m)

    return msa_emb, pair_emb


# ----------------------------------------------------------------------------
# Pure-JAX reference (mirrors the PyTorch forward)
# ----------------------------------------------------------------------------
def input_embedder_ref(batch, params, *, max_relative_idx, max_relative_chain):
    hi = lax.Precision.HIGHEST

    def linear(x, w, b):
        return jnp.dot(x, w, precision=hi) + b

    tf = batch["target_feat"]
    msa = batch["msa_feat"]
    tf_emb_i = linear(tf, params["w_tf_z_i"], params["b_tf_z_i"])
    tf_emb_j = linear(tf, params["w_tf_z_j"], params["b_tf_z_j"])
    pair = tf_emb_i[:, None, :] + tf_emb_j[None, :, :]

    pos = jnp.asarray(batch["residue_index"], jnp.int32)
    asym = jnp.asarray(batch["asym_id"], jnp.int32)
    ent = jnp.asarray(batch["entity_id"], jnp.int32)
    sym = jnp.asarray(batch["sym_id"], jnp.int32)

    offset = pos[:, None] - pos[None, :]
    clipped = jnp.clip(offset + max_relative_idx, 0, 2 * max_relative_idx)
    asym_same = asym[:, None] == asym[None, :]
    final_offset = jnp.where(asym_same, clipped, 2 * max_relative_idx + 1)
    bins_pos = 2 * max_relative_idx + 2
    # values land exactly on the integer boundaries, so argmin|.|-one_hot == equality one_hot
    rel_pos = jax.nn.one_hot(final_offset, bins_pos, dtype=tf.dtype)

    ent_same = ent[:, None] == ent[None, :]
    rel_sym = sym[:, None] - sym[None, :]
    clipped_chain = jnp.clip(rel_sym + max_relative_chain, 0, 2 * max_relative_chain)
    final_chain = jnp.where(ent_same, clipped_chain, 2 * max_relative_chain + 1)
    bins_chain = 2 * max_relative_chain + 2
    rel_chain = jax.nn.one_hot(final_chain, bins_chain, dtype=tf.dtype)

    rel_feat = jnp.concatenate(
        [rel_pos, ent_same[..., None].astype(tf.dtype), rel_chain], axis=-1)
    pair = pair + linear(rel_feat, params["w_relpos"], params["b_relpos"])

    tf_m = linear(tf, params["w_tf_m"], params["b_tf_m"])
    msa_emb = linear(msa, params["w_msa_m"], params["b_msa_m"]) + tf_m[None, :, :]
    return msa_emb, pair


# ----------------------------------------------------------------------------
if __name__ == "__main__":
    N, tf_dim, msa_dim = 16, 22, 49
    c_z, c_m, n_clust = 128, 64, 4
    max_relative_idx, max_relative_chain = 4, 2

    bins_pos = 2 * max_relative_idx + 2
    bins_chain = 2 * max_relative_chain + 2
    no_bins = bins_pos + 1 + bins_chain

    key = jax.random.PRNGKey(0)
    ks = jax.random.split(key, 16)

    batch = {
        "target_feat": jax.random.normal(ks[0], (N, tf_dim), jnp.float32),
        "msa_feat": jax.random.normal(ks[1], (n_clust, N, msa_dim), jnp.float32),
        "residue_index": jax.random.randint(ks[2], (N,), 0, 24),
        "asym_id": jax.random.randint(ks[3], (N,), 0, 3),
        "entity_id": jax.random.randint(ks[4], (N,), 0, 2),
        "sym_id": jax.random.randint(ks[5], (N,), 0, 3),
    }

    def w(k, shape, scale=0.1):
        return scale * jax.random.normal(k, shape, jnp.float32)

    params = {
        "w_tf_z_i": w(ks[6], (tf_dim, c_z)), "b_tf_z_i": w(ks[7], (c_z,)),
        "w_tf_z_j": w(ks[8], (tf_dim, c_z)), "b_tf_z_j": w(ks[9], (c_z,)),
        "w_tf_m": w(ks[10], (tf_dim, c_m)), "b_tf_m": w(ks[11], (c_m,)),
        "w_msa_m": w(ks[12], (msa_dim, c_m)), "b_msa_m": w(ks[13], (c_m,)),
        "w_relpos": w(ks[14], (no_bins, c_z)), "b_relpos": w(ks[15], (c_z,)),
    }

    # row_tile=8 / clust_tile=2 exercise multi-step grids even at toy sizes.
    msa_emb, pair_emb = input_embedder_multimer(
        batch, params,
        max_relative_idx=max_relative_idx,
        max_relative_chain=max_relative_chain,
        row_tile=8, clust_tile=2)
    jax.block_until_ready((msa_emb, pair_emb))

    msa_ref, pair_ref = input_embedder_ref(
        batch, params,
        max_relative_idx=max_relative_idx,
        max_relative_chain=max_relative_chain)

    np.testing.assert_allclose(np.asarray(msa_emb), np.asarray(msa_ref),
                               rtol=1e-4, atol=1e-4)
    np.testing.assert_allclose(np.asarray(pair_emb), np.asarray(pair_ref),
                               rtol=1e-4, atol=1e-4)

    print("KERNEL_OK")
</pallas_src>

<mosaic_0001>
module attributes {stable_mosaic.version = 11 : i64} {
  func.func @_tf_proj_kernel(%arg0: memref<16x22xf32, #tpu.memory_space<vmem>>, %arg1: memref<22x128xf32, #tpu.memory_space<vmem>>, %arg2: memref<1x128xf32, #tpu.memory_space<vmem>>, %arg3: memref<22x128xf32, #tpu.memory_space<vmem>>, %arg4: memref<1x128xf32, #tpu.memory_space<vmem>>, %arg5: memref<22x64xf32, #tpu.memory_space<vmem>>, %arg6: memref<1x64xf32, #tpu.memory_space<vmem>>, %arg7: memref<16x128xf32, #tpu.memory_space<vmem>>, %arg8: memref<16x128xf32, #tpu.memory_space<vmem>>, %arg9: memref<16x64xf32, #tpu.memory_space<vmem>>) attributes {dimension_semantics = [], scalar_prefetch = 0 : i64, scratch_operands = 0 : i64, tpu.core_type = #tpu.core_type<tc>} {
    %c0 = arith.constant 0 : index
    %c0_0 = arith.constant 0 : index
    %0 = vector.load %arg0[%c0, %c0_0] : memref<16x22xf32, #tpu.memory_space<vmem>>, vector<16x22xf32>
    %c0_1 = arith.constant 0 : index
    %c0_2 = arith.constant 0 : index
    %1 = vector.load %arg1[%c0_1, %c0_2] : memref<22x128xf32, #tpu.memory_space<vmem>>, vector<22x128xf32>
    %cst = arith.constant dense<0.000000e+00> : vector<16x128xf32>
    %2 = tpu.matmul %0, %1, %cst {dimension_numbers = #tpu.dot_dimension_numbers<[1], [0], [0], [1], [0, 0, 1, 1], [], []>} : vector<16x22xf32>, vector<22x128xf32>, vector<16x128xf32> -> vector<16x128xf32>
    %c0_3 = arith.constant 0 : index
    %c0_4 = arith.constant 0 : index
    %3 = vector.load %arg2[%c0_3, %c0_4] : memref<1x128xf32, #tpu.memory_space<vmem>>, vector<1x128xf32>
    %4 = vector.broadcast %3 : vector<1x128xf32> to vector<16x128xf32>
    %5 = arith.addf %2, %4 : vector<16x128xf32>
    %c0_5 = arith.constant 0 : index
    %c0_6 = arith.constant 0 : index
    %6 = vector.load %arg7[%c0_5, %c0_6] : memref<16x128xf32, #tpu.memory_space<vmem>>, vector<16x128xf32>
    tpu.vector_store %arg7[%c0_5, %c0_6], %5 {strides = array<i32>} : memref<16x128xf32, #tpu.memory_space<vmem>>, vector<16x128xf32>,
    %c0_7 = arith.constant 0 : index
    %c0_8 = arith.constant 0 : index
    %7 = vector.load %arg3[%c0_7, %c0_8] : memref<22x128xf32, #tpu.memory_space<vmem>>, vector<22x128xf32>
    %cst_9 = arith.constant dense<0.000000e+00> : vector<16x128xf32>
    %8 = tpu.matmul %0, %7, %cst_9 {dimension_numbers = #tpu.dot_dimension_numbers<[1], [0], [0], [1], [0, 0, 1, 1], [], []>} : vector<16x22xf32>, vector<22x128xf32>, vector<16x128xf32> -> vector<16x128xf32>
    %c0_10 = arith.constant 0 : index
    %c0_11 = arith.constant 0 : index
    %9 = vector.load %arg4[%c0_10, %c0_11] : memref<1x128xf32, #tpu.memory_space<vmem>>, vector<1x128xf32>
    %10 = vector.broadcast %9 : vector<1x128xf32> to vector<16x128xf32>
    %11 = arith.addf %8, %10 : vector<16x128xf32>
    %c0_12 = arith.constant 0 : index
    %c0_13 = arith.constant 0 : index
    %12 = vector.load %arg8[%c0_12, %c0_13] : memref<16x128xf32, #tpu.memory_space<vmem>>, vector<16x128xf32>
    tpu.vector_store %arg8[%c0_12, %c0_13], %11 {strides = array<i32>} : memref<16x128xf32, #tpu.memory_space<vmem>>, vector<16x128xf32>,
    %c0_14 = arith.constant 0 : index
    %c0_15 = arith.constant 0 : index
    %13 = vector.load %arg5[%c0_14, %c0_15] : memref<22x64xf32, #tpu.memory_space<vmem>>, vector<22x64xf32>
    %cst_16 = arith.constant dense<0.000000e+00> : vector<16x64xf32>
    %14 = tpu.matmul %0, %13, %cst_16 {dimension_numbers = #tpu.dot_dimension_numbers<[1], [0], [0], [1], [0, 0, 1, 1], [], []>} : vector<16x22xf32>, vector<22x64xf32>, vector<16x64xf32> -> vector<16x64xf32>
    %c0_17 = arith.constant 0 : index
    %c0_18 = arith.constant 0 : index
    %15 = vector.load %arg6[%c0_17, %c0_18] : memref<1x64xf32, #tpu.memory_space<vmem>>, vector<1x64xf32>
    %16 = vector.broadcast %15 : vector<1x64xf32> to vector<16x64xf32>
    %17 = arith.addf %14, %16 : vector<16x64xf32>
    %c0_19 = arith.constant 0 : index
    %c0_20 = arith.constant 0 : index
    %18 = vector.load %arg9[%c0_19, %c0_20] : memref<16x64xf32, #tpu.memory_space<vmem>>, vector<16x64xf32>
    tpu.vector_store %arg9[%c0_19, %c0_20], %17 {strides = array<i32>} : memref<16x64xf32, #tpu.memory_space<vmem>>, vector<16x64xf32>,
    return
  }
}

</mosaic_0001>

<bundles_post_ra>
// kernel: tpu_custom_call.1
= control target key start
LH: loop header
LB: loop body
LE: loop exit
PB: predicated region body
PF: predicated region fallthrough
CT: control target
= control target key end

     0   :  { %15 = vsyncpa [#allocation3], 0  ;;  %s867_s0 = inlined_call_operand.hbm [shape: f32[16,22], index: 0, kind: input, shape index: {}]   ;;  %s868_s1 = inlined_call_operand.hbm [shape: f32[22,128], index: 1, kind: input, shape index: {}]   ;;  %s869_s2 = inlined_call_operand.vmem [shape: f32[1,128], index: 2, kind: input, shape index: {}]   ;;  %s870_s3 = inlined_call_operand.hbm [shape: f32[22,128], index: 3, kind: input, shape index: {}]   ;;  %s871_s4 = inlined_call_operand.vmem [shape: f32[1,128], index: 4, kind: input, shape index: {}]   ;;  %s872_s5 = inlined_call_operand.hbm [shape: f32[22,64], index: 5, kind: input, shape index: {}]   ;;  %s873_s6 = inlined_call_operand.vmem [shape: f32[1,64], index: 6, kind: input, shape index: {}]   ;;  %s874_s7 = inlined_call_operand.hbm [shape: f32[16,128], index: 7, kind: output, shape index: {0}]   ;;  %s875_s8 = inlined_call_operand.hbm [shape: f32[16,128], index: 8, kind: output, shape index: {1}]   ;;  %s876_s9 = inlined_call_operand.hbm [shape: f32[16,64], index: 9, kind: output, shape index: {2}]  }
   0x1   :  { %16 = vsyncpa [#allocation6], 0 }
   0x2   :  { %17 = vsyncpa [#allocation9], 0 }
   0x3   :  { %18 = vsyncpa [#allocation4], 0 }
   0x4   :  { %19 = vsyncpa [#allocation12], 0  ;;  %s656_s30 = smov [#allocation5]   ;;  %s657_s11 = smov [#allocation2]  }
   0x5   :  { %s37_s10 = sshll.u32 %s656_s30, 4  ;;  %s25_s12 = sshll.u32 %s657_s11, 4  ;;  %s38_s10 = int_to_ptr.vmem [resolvable:$true] %s37_s10  ;;  %s715_s12 = int_to_ptr.vmem [resolvable:$true] %s25_s12 }
   0x6   :  { %s492_s15 = scalar_lea.hbm %s868_s1, 384 }
   0x7   :  { %p493_p0 = scmp.ne.s32.totalorder %s868_s1, %s492_s15  ;;  %p496_p1 = scmp.lt.u32.totalorder %s492_s15, %s868_s1 }
   0x9   :  { %p498_p2 = pnand %p496_p1, %p493_p0 }
   0xb   :  { %501 = shalt.err (!%p498_p2)
}
   0xc   :  { %s502_s20 = scalar_lea.vmem %s38_s10, 384  ;;  %p507_p4 = scmp.lt.s32.totalorder %s38_s10, %s38_s10 }
   0xd   :  { %p503_p3 = scmp.ne.s32.totalorder %s38_s10, %s502_s20  ;;  %p508_p5 = scmp.lt.s32.totalorder %s502_s20, %s502_s20 }
   0xf   :  { %p509_p6 = por %p508_p5, %p507_p4 }
  0x11   :  { %p510_p7 = pnand %p509_p6, %p503_p3 }
  0x13   :  { %513 = shalt.err (!%p510_p7)
}
  0x14   :  { %s658_s21 = smov 128   ;;  %s659_s22 = smov 8  }
  0x15   :  { %43 = dma.hbm_to_vmem [thread:$0]  %s868_s1, 384, %s38_s10, [#allocation6], %s658_s21, %s658_s21, %s659_s22  }
  0x16   :  { %s514_s27 = scalar_lea.hbm %s867_s0, 256 }
  0x17   :  { %p515_p8 = scmp.ne.s32.totalorder %s867_s0, %s514_s27  ;;  %p518_p9 = scmp.lt.u32.totalorder %s514_s27, %s867_s0 }
  0x19   :  { %p520_p10 = pnand %p518_p9, %p515_p8 }
  0x1b   :  { %523 = shalt.err (!%p520_p10)
}
  0x1c   :  { %s524_s13 = scalar_lea.vmem %s715_s12, 256  ;;  %p529_p12 = scmp.lt.s32.totalorder %s715_s12, %s715_s12 }
  0x1d   :  { %p525_p11 = scmp.ne.s32.totalorder %s715_s12, %s524_s13  ;;  %p530_p13 = scmp.lt.s32.totalorder %s524_s13, %s524_s13 }
  0x1f   :  { %p531_p0 = por %p530_p13, %p529_p12 }
  0x21   :  { %p532_p1 = pnand %p531_p0, %p525_p11 }
  0x23   :  { %535 = shalt.err (!%p532_p1)
}
  0x24   :  { %31 = dma.hbm_to_vmem [thread:$0]  %s867_s0, 256, %s715_s12, [#allocation3], %s658_s21, %s658_s21, %s659_s22  }
  0x25   :  { %s660_s14 = smov [#allocation7]   ;;  %s661_s16 = smov [#allocation8]  }
  0x26   :  { %s51_s15 = sshll.u32 %s660_s14, 4  ;;  %s65_s17 = sshll.u32 %s661_s16, 4  ;;  %s52_s15 = int_to_ptr.vmem [resolvable:$true] %s51_s15  ;;  %s752_s17 = int_to_ptr.vmem [resolvable:$true] %s65_s17 }
  0x27   :  { %s536_s20 = scalar_lea.hbm %s870_s3, 384 }
  0x28   :  { %p537_p2 = scmp.ne.s32.totalorder %s870_s3, %s536_s20  ;;  %p540_p3 = scmp.lt.u32.totalorder %s536_s20, %s870_s3 }
  0x2a   :  { %p542_p4 = pnand %p540_p3, %p537_p2 }
  0x2c   :  { %545 = shalt.err (!%p542_p4)
}
  0x2d   :  { %s546_s0 = scalar_lea.vmem %s52_s15, 384  ;;  %p551_p6 = scmp.lt.s32.totalorder %s52_s15, %s52_s15 }
  0x2e   :  { %p547_p5 = scmp.ne.s32.totalorder %s52_s15, %s546_s0  ;;  %p552_p7 = scmp.lt.s32.totalorder %s546_s0, %s546_s0 }
  0x30   :  { %p553_p8 = por %p552_p7, %p551_p6 }
  0x32   :  { %p554_p9 = pnand %p553_p8, %p547_p5 }
  0x34   :  { %557 = shalt.err (!%p554_p9)
}
  0x35   :  { %57 = dma.hbm_to_vmem [thread:$0]  %s870_s3, 384, %s52_s15, [#allocation6], %s658_s21, %s658_s21, %s659_s22  }
  0x36   :  { %s558_s30 = scalar_lea.hbm %s872_s5, 384 }
  0x37   :  { %p559_p10 = scmp.ne.s32.totalorder %s872_s5, %s558_s30  ;;  %p562_p11 = scmp.lt.u32.totalorder %s558_s30, %s872_s5 }
  0x39   :  { %p564_p12 = pnand %p562_p11, %p559_p10 }
  0x3b   :  { %567 = shalt.err (!%p564_p12)
}
  0x3c   :  { %s568_s14 = scalar_lea.vmem %s752_s17, 384  ;;  %p573_p0 = scmp.lt.s32.totalorder %s752_s17, %s752_s17 }
  0x3d   :  { %p569_p13 = scmp.ne.s32.totalorder %s752_s17, %s568_s14  ;;  %p574_p1 = scmp.lt.s32.totalorder %s568_s14, %s568_s14 }
  0x3f   :  { %p575_p2 = por %p574_p1, %p573_p0 }
  0x41   :  { %p576_p3 = pnand %p575_p2, %p569_p13 }
  0x43   :  { %579 = shalt.err (!%p576_p3)
}
  0x44   :  { %71 = dma.hbm_to_vmem [thread:$0]  %s872_s5, 384, %s752_s17, [#allocation9], %s658_s21, %s658_s21, %s659_s22  }
  0x45   :  { %646 = dma.done.wait [#allocation3], 256  }
  0x46   :  { %647 = vsyncadd [#allocation3], 4294967040 }
  0x47   :  { %648 = dma.done.wait [#allocation6], 768  }
  0x48   :  { %649 = vsyncadd [#allocation6], 4294966528 }
  0x49   :  { %650 = dma.done.wait [#allocation9], 384  }
  0x4a   :  { %651 = vsyncadd [#allocation9], 4294966912  ;;  %vm98_vm0 = vcmask 179200   ;;  %v88_v0 = vld [vmem:[#allocation5] sm:$0xff]  ;;  %v89_v1 = vld [vmem:[#allocation5 + $0x8] sm:$0xff]  ;;  %vm105_vm1 = vcmask 1045504  }
  0x4b   :  { %v471_v2 = vpack.c.bf16 %v89_v1, %v88_v0  ;;  %v86_v3 = vld [vmem:[#allocation2] sm:$0xff]  ;;  %v186_v4 = vld [vmem:[#allocation7] sm:$0xff]  ;;  %v187_v5 = vld [vmem:[#allocation7 + $0x8] sm:$0xff]  ;;  %s662_s17 = smov [#allocation10]   ;;  %s663_s23 = smov [#allocation11]  }
  0x4c   :  { %v90_v6 = vld [vmem:[#allocation5 + $0x10] sm:$0x3f]  ;;  %450 = vmatprep.mubr.msk.f32.mxu0 %vm98_vm0, %v86_v3  ;;  %v475_v7 = vpack.c.bf16 %v187_v5, %v186_v4  ;;  %v277_v9 = vld [vmem:[#allocation8 + $0x8] sm:$0xff]  ;;  %459 = vmatprep.mubr.msk.f32.mxu1 %vm98_vm0, %v86_v3  ;;  %v188_v10 = vld [vmem:[#allocation7 + $0x10] sm:$0x3f]  ;;  %s372_s18 = sshll.u32 %s662_s17, 4  ;;  %s373_s18 = int_to_ptr.vmem [resolvable:$true] %s372_s18 }
  0x4d   :  { %v276_v8 = vld [vmem:[#allocation8] sm:$0xff]  ;;  %472 = vmatprep.subr.bf16.mxu0 %v471_v2  ;;  %v87_v12 = vld [vmem:[#allocation2 + $0x8] sm:$0xff]  ;;  %v278_v13 = vld [vmem:[#allocation8 + $0x10] sm:$0x3f]  ;;  %s384_s24 = sshll.u32 %s663_s23, 4  ;;  %s664_s26 = smov [#allocation13]   ;;  %s810_s24 = int_to_ptr.vmem [resolvable:$true] %s384_s24 }
  0x4e   :  { %474 = vmatpush3.bf16.msra.mxu0 %v471_v2  ;;  %476 = vmatprep.subr.bf16.mxu1 %v475_v7  ;;  %v479_v11 = vpack.c.bf16 %v277_v9, %v276_v8  ;;  %v417_v14 = vld [vmem:[%s869_s2] ss:$0 sm:$0xff]  ;;  %s580_s0 = scalar_lea.vmem %s373_s18, 256  ;;  %p585_p5 = scmp.lt.s32.totalorder %s373_s18, %s373_s18 }
  0x4f   :  { %448 = vmatprep.subr.msk.mxu0 %vm105_vm1, %v90_v6  ;;  %478 = vmatpush3.bf16.msra.mxu1 %v475_v7  ;;  %v421_v16 = vld [vmem:[%s871_s4] ss:$0 sm:$0xff]  ;;  %s812_s4 = sshll.u32 %s664_s26, 4  ;;  %p581_p4 = scmp.ne.s32.totalorder %s373_s18, %s580_s0  ;;  %s397_s4 = int_to_ptr.vmem [resolvable:$true] %s812_s4 }
  0x50   :  { %457 = vmatprep.subr.msk.mxu1 %vm105_vm1, %v188_v10  ;;  %v425_v24 = vld [vmem:[%s873_s6] ss:$0 sm:$0xff]  ;;  %p586_p6 = scmp.lt.s32.totalorder %s580_s0, %s580_s0 }
  0x52   :  { %449 = vmatpush3.msk.msra.mxu0 %vm105_vm1, %v90_v6  ;;  %p587_p7 = por %p586_p6, %p585_p5 }
  0x53   :  { %451 = vmatmul.mubr.msk.f32.vlgmr.msra.gmra.mrb[0].mxu0 %vm98_vm0, %v87_v12  ;;  %480 = vmatprep.subr.bf16.mxu0 %v479_v11 }
  0x54   :  { %482 = vmatpush3.bf16.msra.mxu0 %v479_v11  ;;  %458 = vmatpush3.msk.msra.mxu1 %vm105_vm1, %v188_v10  ;;  %p588_p8 = pnand %p587_p7, %p581_p4 }
  0x55   :  { %466 = vmatprep.subr.msk.mxu0 %vm105_vm1, %v278_v13  ;;  %460 = vmatmul.mubr.msk.f32.vlgmr.msra.gmra.mrb[0].mxu1 %vm98_vm0, %v87_v12 }
  0x56   :  { %468 = vmatprep.mubr.msk.f32.mxu0 %vm98_vm0, %v86_v3 }
  0x58   :  { %467 = vmatpush3.msk.msra.mxu0 %vm105_vm1, %v278_v13 }
  0x59   :  { %469 = vmatmul.mubr.msk.f32.vlgmr.msra.gmra.mrb[2].mxu0 %vm98_vm0, %v87_v12 }
 0x126   :  { %v452_v15 = vpop.f32.mrb[0].mxu0 }
 0x127   :  { %v181_v17 = vadd.f32 %v452_v15, %v417_v14  ;;  %v175_v18 = vpop.f32.mrb[1].mxu0 }
 0x128   :  { %v176_v19 = vadd.f32 %v417_v14, %v175_v18  ;;  %v461_v20 = vpop.f32.mrb[0].mxu1 }
 0x129   :  { %185 = vst [vmem:[#allocation10 + $0x8] sm:$0xff] %v181_v17  ;;  %v271_v21 = vadd.f32 %v461_v20, %v421_v16  ;;  %v265_v22 = vpop.f32.mrb[1].mxu1 }
 0x12a   :  { %184 = vst [vmem:[#allocation10] sm:$0xff] %v176_v19  ;;  %v266_v23 = vadd.f32 %v421_v16, %v265_v22 }
 0x12b   :  { %275 = vst [vmem:[#allocation11 + $0x8] sm:$0xff] %v271_v21 }
 0x12c   :  { %591 = shalt.err (!%p588_p8)
}
 0x12d   :  { %s592_s28 = scalar_lea.hbm %s874_s7, 256 }
 0x12e   :  { %p593_p9 = scmp.ne.s32.totalorder %s874_s7, %s592_s28  ;;  %p596_p10 = scmp.lt.u32.totalorder %s592_s28, %s874_s7 }
 0x130   :  { %p598_p11 = pnand %p596_p10, %p593_p9 }
 0x132   :  { %601 = shalt.err (!%p598_p11)
}
 0x133   :  { %378 = dma.vmem_to_hbm [thread:$0]  %s373_s18, 256, %s874_s7, [#allocation4], %s658_s21, %s658_s21, %s659_s22   ;;  %274 = vst [vmem:[#allocation11] sm:$0xff] %v266_v23  ;;  %v470_v25 = vpop.f32.mrb[2].mxu0  ;;  %vm364_vm2 = vcmask 523264  }
 0x134   :  { %v361_v26 = vadd.f32 %v470_v25, %v425_v24  ;;  %v355_v27 = vpop.f32.mrb[3].mxu0  ;;  %s602_s10 = scalar_lea.vmem %s810_s24, 256  ;;  %p607_p13 = scmp.lt.s32.totalorder %s810_s24, %s810_s24 }
 0x135   :  { %p603_p12 = scmp.ne.s32.totalorder %s810_s24, %s602_s10  ;;  %p608_p0 = scmp.lt.s32.totalorder %s602_s10, %s602_s10 }
 0x137   :  { %p609_p1 = por %p608_p0, %p607_p13 }
 0x139   :  { %p610_p2 = pnand %p609_p1, %p603_p12 }
 0x13b   :  { %613 = shalt.err (!%p610_p2)
}
 0x13c   :  { %s614_s15 = scalar_lea.hbm %s875_s8, 256 }
 0x13d   :  { %p615_p3 = scmp.ne.s32.totalorder %s875_s8, %s614_s15  ;;  %p618_p4 = scmp.lt.u32.totalorder %s614_s15, %s875_s8 }
 0x13f   :  { %p620_p5 = pnand %p618_p4, %p615_p3 }
 0x141   :  { %623 = shalt.err (!%p620_p5)
}
 0x142   :  { %390 = dma.vmem_to_hbm [thread:$0]  %s810_s24, 256, %s875_s8, [#allocation12], %s658_s21, %s658_s21, %s659_s22   ;;  %v356_v28 = vadd.f32 %v425_v24, %v355_v27  ;;  %366 = vst.msk [vmem:[#allocation13 + $0x8] sm:$0xff] %vm364_vm2, %v361_v26 }
 0x143   :  { %s624_s20 = scalar_lea.vmem %s397_s4, 256  ;;  %p629_p7 = scmp.lt.s32.totalorder %s397_s4, %s397_s4 }
 0x144   :  { %365 = vst.msk [vmem:[#allocation13] sm:$0xff] %vm364_vm2, %v356_v28  ;;  %p625_p6 = scmp.ne.s32.totalorder %s397_s4, %s624_s20  ;;  %p630_p8 = scmp.lt.s32.totalorder %s624_s20, %s624_s20 }
 0x146   :  { %p631_p9 = por %p630_p8, %p629_p7 }
 0x148   :  { %p632_p10 = pnand %p631_p9, %p625_p6 }
 0x14a   :  { %635 = shalt.err (!%p632_p10)
}
 0x14b   :  { %s636_s25 = scalar_lea.hbm %s876_s9, 256 }
 0x14c   :  { %p637_p11 = scmp.ne.s32.totalorder %s876_s9, %s636_s25  ;;  %p640_p12 = scmp.lt.u32.totalorder %s636_s25, %s876_s9 }
 0x14e   :  { %p642_p13 = pnand %p640_p12, %p637_p11 }
 0x150   :  { %645 = shalt.err (!%p642_p13)
}
 0x151   :  { %402 = dma.vmem_to_hbm [thread:$0]  %s397_s4, 256, %s876_s9, [#allocation12], %s658_s21, %s658_s21, %s659_s22  }
 0x152   :  { %652 = dma.done.wait [#allocation4], 256  }
 0x153   :  { %653 = vsyncadd [#allocation4], 4294967040 }
 0x154   :  { %654 = dma.done.wait [#allocation12], 512  }
 0x155   :  { %655 = vsyncadd [#allocation12], 4294966784 }
 0x156   :  { %412 = vsyncpa [#allocation3], 1 }
 0x157   :  { %413 = vsyncpa [#allocation6], 1 }
 0x158   :  { %414 = vsyncpa [#allocation9], 1 }
 0x159   :  { %415 = vsyncpa [#allocation4], 1 }
 0x15a   :  { %416 = vsyncpa [#allocation12], 1 }

</bundles_post_ra>
